<compile_context>
chip_gen: v6e
topology: v6e:2x2x1
jax: 0.10.0
libtpu: 0.0.40
codegen_flags: <defaults>
</compile_context>

<pallas_src>
import functools

import jax
import jax.numpy as jnp
from jax.experimental import pallas as pl
from jax.experimental.pallas import tpu as pltpu


def _conv1x1_kernel(x_ref, w_ref, b_ref, o_ref):
    # x_ref: (Nb, Cin, ts)   spatial tile of Nb batch elements (native NCHW layout)
    # w_ref: (Cout, Cin)     precomputed weight-normalized weight, activation dtype
    # b_ref: (Cout, 1)       bias, f32
    # o_ref: (Nb, Cout, ts)
    w = w_ref[...]
    bias = b_ref[...]
    for i in range(x_ref.shape[0]):          # Nb is a small static int -> unrolled
        y = jnp.dot(w, x_ref[i], preferred_element_type=jnp.float32)
        o_ref[i] = (y + bias).astype(o_ref.dtype)


def _vmem_capacity_bytes():
    try:
        return int(pltpu.get_tpu_info().vmem_capacity_bytes)
    except Exception:
        return 64 << 20  # conservative fallback (v7x per-TensorCore VMEM)


def _choose_params(N, Cin, Cout, HW, itemsize, vmem_cap):
    """Pick (batch block Nb, spatial tile ts) from the actual VMEM capacity."""
    budget = int(vmem_cap * 0.70)                       # ~45 MiB on v7x, ~90 MiB on v5e/v6e
    # Weight/bias are double-buffered by default; subtract their residency first.
    wb_bytes = 2 * (Cout * Cin * itemsize + Cout * 4)
    budget_tiles = max(budget - wb_bytes, 4 << 20)

    per_lane = (Cin + Cout) * itemsize                  # in+out bytes per spatial column
    HW128 = pl.cdiv(HW, 128) * 128

    # Largest lane-aligned spatial tile (Nb=1) fitting the double-buffered budget.
    ts_max = budget_tiles // (2 * per_lane)
    ts = max(128, min(HW128, (ts_max // 128) * 128))

    # Small-HW regime: whole spatial row fits one tile -> block batch elements so the
    # per-step DMA gets back into the MiB range.
    nb = 1
    if ts >= HW128:
        ts = HW128
        step_bytes = ts * per_lane
        target_step_bytes = 4 << 20
        cap_nb = max(1, budget_tiles // (2 * ts * per_lane))
        nb = max(1, min(N, target_step_bytes // max(step_bytes, 1), cap_nb, 16))

    # Keep >= 2 grid steps whenever possible so both v7x TensorCores are used.
    if pl.cdiv(N, nb) * pl.cdiv(HW, ts) < 2:
        if HW > 128:
            ts = max(128, pl.cdiv(pl.cdiv(HW, 2), 128) * 128)
        elif N > 1:
            nb = max(1, pl.cdiv(N, 2))
    return nb, ts


@functools.partial(jax.jit, static_argnames=("nb", "ts", "vmem_limit"))
def _conv1x1_impl(x_nchw, v, g, b, *, nb, ts, vmem_limit):
    N, Cin, H, W = x_nchw.shape
    Cout = v.shape[0]
    HW = H * W

    # ---- Hoisted weight-norm: W = g * v / ||v||, computed once, cast to the
    # activation dtype so the MXU gets native-dtype operands (f32 accumulate).
    v32 = v.astype(jnp.float32)
    inv_norm = jax.lax.rsqrt(jnp.sum(v32 * v32, axis=1, keepdims=True))    # (Cout, 1)
    w = (g.astype(jnp.float32).reshape(Cout, 1) * v32 * inv_norm).astype(x_nchw.dtype)
    b2d = b.astype(jnp.float32).reshape(Cout, 1)

    # ---- Native-layout flatten (no transpose, no padding).
    x3d = x_nchw.reshape(N, Cin, HW)
    itemsize = jnp.dtype(x_nchw.dtype).itemsize

    grid = (pl.cdiv(N, nb), pl.cdiv(HW, ts))
    cost = pl.CostEstimate(
        flops=2 * N * HW * Cin * Cout,
        transcendentals=0,
        bytes_accessed=N * HW * (Cin + Cout) * itemsize + Cout * Cin * itemsize + Cout * 4,
    )

    y3d = pl.pallas_call(
        _conv1x1_kernel,
        out_shape=jax.ShapeDtypeStruct((N, Cout, HW), x_nchw.dtype),
        grid_spec=pltpu.PrefetchScalarGridSpec(
            num_scalar_prefetch=0,
            grid=grid,
            in_specs=[
                # (Nb, Cin, ts) tile per (batch-block, spatial-block) grid point;
                # ragged boundary blocks are clipped by Pallas (no wrapper pad).
                pl.BlockSpec((nb, Cin, ts), lambda n, s: (n, 0, s)),
                # weight / bias: constant index_map -> resident in VMEM, never re-DMA'd
                pl.BlockSpec((Cout, Cin), lambda n, s: (0, 0)),
                pl.BlockSpec((Cout, 1), lambda n, s: (0, 0)),
            ],
            out_specs=pl.BlockSpec((nb, Cout, ts), lambda n, s: (n, 0, s)),
        ),
        compiler_params=pltpu.CompilerParams(
            dimension_semantics=("parallel", "parallel"),
            vmem_limit_bytes=vmem_limit),
        cost_estimate=cost,
    )(x3d, w, b2d)

    return y3d.reshape(N, Cout, H, W)


def conv1x1(x_nchw, v, g, b):
    """Weight-normalized 1x1 conv.

    x_nchw: (N, Cin, H, W)
    v:      (Cout, Cin)    weight_norm direction (Conv2d weight squeezed of 1x1 dims)
    g:      (Cout,)        weight_norm magnitude
    b:      (Cout,)        bias
    returns (N, Cout, H, W)
    """
    N, Cin, H, W = x_nchw.shape
    Cout = v.shape[0]
    HW = H * W
    itemsize = jnp.dtype(x_nchw.dtype).itemsize

    vmem_cap = _vmem_capacity_bytes()
    nb, ts = _choose_params(N, Cin, Cout, HW, itemsize, vmem_cap)

    # VMEM limit derived from the *chosen* tile: double-buffered x/y tiles plus
    # double-buffered (resident) W and bias, with headroom for compiler scratch.
    need = 2 * nb * ts * (Cin + Cout) * itemsize + 2 * (Cout * Cin * itemsize + Cout * 4)
    vmem_limit = int(min(max(need + (8 << 20), 32 << 20), vmem_cap - (2 << 20)))
    vmem_limit = max(vmem_limit, need)   # never undercut the actual requirement

    return _conv1x1_impl(x_nchw, v, g, b, nb=nb, ts=ts, vmem_limit=vmem_limit)


def _reference(x_nchw, v, g, b):
    # Pure-JAX reference of weight_norm(Conv2d 1x1).
    norm = jnp.sqrt(jnp.sum(v.astype(jnp.float32) ** 2, axis=1, keepdims=True))
    w = g.reshape(-1, 1) * v / norm                                  # (Cout, Cin)
    y = jnp.einsum("nchw,oc->nohw", x_nchw.astype(jnp.float32), w)
    return y + b.reshape(1, -1, 1, 1)


if __name__ == "__main__":
    key = jax.random.PRNGKey(0)
    k_x, k_v, k_g, k_b = jax.random.split(key, 4)

    N, Cin, Cout, H, W = 2, 4, 8, 16, 16

    x = jax.random.normal(k_x, (N, Cin, H, W), dtype=jnp.float32)
    # Deterministic synthetic parameters (shapes from nn.Conv2d(Cin, Cout, 1) under
    # weight_norm: v = weight_v squeezed of its 1x1 spatial dims).
    v = jax.random.normal(k_v, (Cout, Cin), dtype=jnp.float32) * 0.5
    g = jax.random.uniform(k_g, (Cout,), dtype=jnp.float32, minval=0.5, maxval=1.5)
    b = jax.random.normal(k_b, (Cout,), dtype=jnp.float32) * 0.1

    y = jax.block_until_ready(conv1x1(x, v, g, b))
    y_ref = _reference(x, v, g, b)
    assert y.shape == (N, Cout, H, W)
    assert jnp.allclose(y, y_ref, atol=1e-4, rtol=1e-4), (
        float(jnp.max(jnp.abs(y - y_ref))))

    # Ragged spatial extent (H*W not a multiple of 128/tile) + batch not dividing the
    # batch block: exercises the no-pad path where Pallas clips boundary blocks.
    N2, H2, W2 = 3, 13, 11
    x2 = jax.random.normal(k_x, (N2, Cin, H2, W2), dtype=jnp.float32)
    y2 = jax.block_until_ready(conv1x1(x2, v, g, b))
    y2_ref = _reference(x2, v, g, b)
    assert y2.shape == (N2, Cout, H2, W2)
    assert jnp.allclose(y2, y2_ref, atol=1e-4, rtol=1e-4), (
        float(jnp.max(jnp.abs(y2 - y2_ref))))

    print("KERNEL_OK")
</pallas_src>

<mosaic_0001>
module attributes {stable_mosaic.version = 11 : i64} {
  func.func @_conv1x1_kernel(%arg0: i32, %arg1: i32, %arg2: memref<2x4x128xf32, #tpu.memory_space<vmem>>, %arg3: memref<8x4xf32, #tpu.memory_space<vmem>>, %arg4: memref<8x1xf32, #tpu.memory_space<vmem>>, %arg5: memref<2x8x128xf32, #tpu.memory_space<vmem>>) attributes {dimension_semantics = [#tpu.dimension_semantics<parallel>, #tpu.dimension_semantics<parallel>], iteration_bounds = array<i64: 1, 2>, scalar_prefetch = 0 : i64, scratch_operands = 0 : i64, tpu.core_type = #tpu.core_type<tc>, window_params = [{transform_indices = @transform_0, window_bounds = array<i64: 2, 4, 128>}, {pipeline_mode = #tpu.pipeline_mode<synchronous>, transform_indices = @transform_1, window_bounds = array<i64: 8, 4>}, {pipeline_mode = #tpu.pipeline_mode<synchronous>, transform_indices = @transform_2, window_bounds = array<i64: 8, 1>}, {transform_indices = @transform_3, window_bounds = array<i64: 2, 8, 128>}]} {
    %c0 = arith.constant 0 : index
    %c0_0 = arith.constant 0 : index
    %0 = vector.load %arg3[%c0, %c0_0] : memref<8x4xf32, #tpu.memory_space<vmem>>, vector<8x4xf32>
    %c0_1 = arith.constant 0 : index
    %c0_2 = arith.constant 0 : index
    %1 = vector.load %arg4[%c0_1, %c0_2] : memref<8x1xf32, #tpu.memory_space<vmem>>, vector<8x1xf32>
    %c0_3 = arith.constant 0 : index
    %c0_4 = arith.constant 0 : index
    %c0_5 = arith.constant 0 : index
    %2 = vector.load %arg2[%c0_3, %c0_4, %c0_5] : memref<2x4x128xf32, #tpu.memory_space<vmem>>, vector<1x4x128xf32>
    %3 = vector.shape_cast %2 : vector<1x4x128xf32> to vector<4x128xf32>
    %cst = arith.constant dense<0.000000e+00> : vector<8x128xf32>
    %4 = tpu.matmul %0, %3, %cst {dimension_numbers = #tpu.dot_dimension_numbers<[1], [0], [0], [1], [0, 0, 1, 1], [], []>} : vector<8x4xf32>, vector<4x128xf32>, vector<8x128xf32> -> vector<8x128xf32>
    %5 = vector.broadcast %1 : vector<8x1xf32> to vector<8x128xf32>
    %6 = arith.addf %4, %5 : vector<8x128xf32>
    %c0_6 = arith.constant 0 : index
    %c0_7 = arith.constant 0 : index
    %c0_8 = arith.constant 0 : index
    %7 = vector.load %arg5[%c0_6, %c0_7, %c0_8] : memref<2x8x128xf32, #tpu.memory_space<vmem>>, vector<1x8x128xf32>
    %8 = vector.shape_cast %7 : vector<1x8x128xf32> to vector<8x128xf32>
    %9 = vector.shape_cast %6 : vector<8x128xf32> to vector<1x8x128xf32>
    tpu.vector_store %arg5[%c0_6, %c0_7, %c0_8], %9 {strides = array<i32>} : memref<2x8x128xf32, #tpu.memory_space<vmem>>, vector<1x8x128xf32>,
    %c1 = arith.constant 1 : index
    %c0_9 = arith.constant 0 : index
    %c0_10 = arith.constant 0 : index
    %10 = vector.load %arg2[%c1, %c0_9, %c0_10] : memref<2x4x128xf32, #tpu.memory_space<vmem>>, vector<1x4x128xf32>
    %11 = vector.shape_cast %10 : vector<1x4x128xf32> to vector<4x128xf32>
    %cst_11 = arith.constant dense<0.000000e+00> : vector<8x128xf32>
    %12 = tpu.matmul %0, %11, %cst_11 {dimension_numbers = #tpu.dot_dimension_numbers<[1], [0], [0], [1], [0, 0, 1, 1], [], []>} : vector<8x4xf32>, vector<4x128xf32>, vector<8x128xf32> -> vector<8x128xf32>
    %13 = vector.broadcast %1 : vector<8x1xf32> to vector<8x128xf32>
    %14 = arith.addf %12, %13 : vector<8x128xf32>
    %c1_12 = arith.constant 1 : index
    %c0_13 = arith.constant 0 : index
    %c0_14 = arith.constant 0 : index
    %15 = vector.load %arg5[%c1_12, %c0_13, %c0_14] : memref<2x8x128xf32, #tpu.memory_space<vmem>>, vector<1x8x128xf32>
    %16 = vector.shape_cast %15 : vector<1x8x128xf32> to vector<8x128xf32>
    %17 = vector.shape_cast %14 : vector<8x128xf32> to vector<1x8x128xf32>
    tpu.vector_store %arg5[%c1_12, %c0_13, %c0_14], %17 {strides = array<i32>} : memref<2x8x128xf32, #tpu.memory_space<vmem>>, vector<1x8x128xf32>,
    return
  }
  func.func @transform_0(%arg0: i32, %arg1: i32) -> (i32, i32, i32) {
    %c0_i32 = arith.constant 0 : i32
    %c0_i32_0 = arith.constant 0 : i32
    return %arg0, %c0_i32, %arg1 : i32, i32, i32
  }
  func.func @transform_1(%arg0: i32, %arg1: i32) -> (i32, i32) {
    %c0_i32 = arith.constant 0 : i32
    %c0_i32_0 = arith.constant 0 : i32
    %c0_i32_1 = arith.constant 0 : i32
    return %c0_i32, %c0_i32_0 : i32, i32
  }
  func.func @transform_2(%arg0: i32, %arg1: i32) -> (i32, i32) {
    %c0_i32 = arith.constant 0 : i32
    %c0_i32_0 = arith.constant 0 : i32
    %c0_i32_1 = arith.constant 0 : i32
    return %c0_i32, %c0_i32_0 : i32, i32
  }
  func.func @transform_3(%arg0: i32, %arg1: i32) -> (i32, i32, i32) {
    %c0_i32 = arith.constant 0 : i32
    %c0_i32_0 = arith.constant 0 : i32
    return %arg0, %c0_i32, %arg1 : i32, i32, i32
  }
}

</mosaic_0001>

<bundles_post_ra>
// kernel: _conv1x1_impl.1
= control target key start
LH: loop header
LB: loop body
LE: loop exit
PB: predicated region body
PF: predicated region fallthrough
CT: control target
= control target key end

     0   :  { %s655_s12 = smov 0   ;;  %s657_s13 = smov 0   ;;  %s733_s0 = inlined_call_operand.vmem [shape: f32[2,4,256], index: 0, kind: input, shape index: {}]   ;;  %s734_s1 = inlined_call_operand.vmem [shape: f32[8,4], index: 1, kind: input, shape index: {}]   ;;  %s735_s2 = inlined_call_operand.vmem [shape: f32[8,1], index: 2, kind: input, shape index: {}]   ;;  %s736_s3 = inlined_call_operand.vmem [shape: f32[2,8,256], index: 3, kind: output, shape index: {}]  }
   0x1   :  { %s659_s14 = smov 0   ;;  %s661_s15 = smov 0  }
   0x2   :  { %s663_s16 = smov 0  }
   0x3 LB: > { %s22_s17 = sadd.s32 1, %s626_s15  ;;  %s515_s18 = sadd.s32 4294967295, %s630_s16   ;;  %s630_s16 = sphi %s663_s16, %s13_s16   ;;  %s626_s15 = sphi %s661_s15, %s741_s15   ;;  %s622_s14 = sphi %s659_s14, %s740_s14   ;;  %s618_s13 = sphi %s657_s13, %s739_s13   ;;  %s614_s12 = sphi %s655_s12, %s738_s12  }
   0x4   : > { %p23_p0 = scmp.ge.s32.totalorder %s22_s17, 2  ;;  %p41_p1 = scmp.ne.s32.totalorder %s618_s13, %s614_s12 }
   0x5   : > { %p42_p2 = scmp.eq.s32.totalorder %s630_s16, 0  ;;  %p115_p4 = scmp.eq.s32.totalorder %s515_s18, 1 }
   0x6   : > { %s743_s17 = smov (%p23_p0, %s22_s17), 0  ;;  %s34_s20 = sadd.s32 1, %s618_s13 }
   0x7   : > { %p43_p3 = por %p42_p2, %p41_p1  ;;  %s30_s19 = ssub.s32 %s626_s15, %s743_s17 }
   0x8   : > { %p32_p5 = scmp.eq.s32.totalorder %s30_s19, 0  ;;  %p690_p6 = por %p115_p4, %p41_p1 }
   0x9   : > { %p518_p7 = scmp.ge.s32.totalorder %s630_s16, 2 }
   0xa   : > { %s695_s22 = scalar_select %p32_p5, %s618_s13, %s34_s20  }
   0xb   : > { %143 = sbr.rel (%p518_p7) target bundleno = 21 (0x15), region = 24 }
  0x10   : > { %146 = sbr.rel (!%p43_p3) target bundleno = 21 (0x15), region = 28  ;;  %s148_s23 = sand.u32 (%p43_p3), 1, %s618_s13  }
  0x11   : > { %s520_s24 = sshll.u32 (%p43_p3), %s626_s15, 2  ;;  %s519_s25 = sshll.u32 (%p43_p3), %s148_s23, 3 }
  0x12   : > { %s155_s28 = scalar_lea.vmem (%p43_p3), %s733_s0, %s520_s24  ;;  %s150_s29 = scalar_lea.vmem (%p43_p3), [#allocation2], %s519_s25 }
  0x13   : > { %v172_v0 = vld [vmem:[%s155_s28] sm:$0xf] (%p43_p3)  ;;  %v174_v1 = vld [vmem:[%s155_s28 + $0x8] sm:$0xf] (%p43_p3) }
  0x14   : > { %173 = vst [vmem:[%s150_s29] sm:$0xf] (%p43_p3), %v172_v0  ;;  %175 = vst [vmem:[%s150_s29 + $0x4] sm:$0xf] (%p43_p3), %v174_v1 }
  0x15 PF: > { %p521_p8 = scmp.ge.s32.totalorder %s630_s16, 1  ;;  %p202_p9 = scmp.lt.s32.totalorder %s630_s16, 3 }
  0x17   : > { %p203_p10 = pnand %p521_p8, %p202_p9 }
  0x18   : > { %s209_s30 = sand.u32 (!%p203_p10), 1, %s614_s12  }
  0x19   : > { %206 = sbr.rel (%p203_p10) target bundleno = 239 (0xef), region = 69  ;;  %s522_s4 = sshll.u32 (!%p203_p10), %s209_s30, 3 }
  0x1a   : > { %s211_s7 = scalar_lea.vmem (!%p203_p10), [#allocation2], %s522_s4  ;;  %s523_s10 = sshll.u32 (!%p203_p10), %s209_s30, 4 }
  0x1b   : > { %s230_s11 = scalar_lea.vmem (!%p203_p10), [#allocation3], %s523_s10 }
  0x1e   : > { %v632_v2 = vmov 0.0   ;;  %vm245_vm0 = vcmask 1043456   ;;  %vm633_vm1 = vmmov 0   ;;  %v233_v3 = vld [vmem:[%s734_s1] sm:$0xff]  ;;  %vm241_vm2 = vcmask 31744   ;;  %s531_s12 = sshll.u32 (%p690_p6), %s622_s14, 3 }
  0x1f   : > { %538 = vmatprep.subr.mxu0 %v632_v2  ;;  %543 = vmatprep.subr.mxu1 %v632_v2  ;;  %v235_v4 = vld [vmem:[%s211_s7] sm:$0xf]  ;;  %v526_v5 = vld [vmem:[%s211_s7 + $0x4] sm:$0xf]  ;;  %v634_v6 = vmov 0   ;;  %s408_s20 = scalar_lea.vmem (%p690_p6), %s736_s3, %s531_s12 }
  0x20   : > { %540 = vmatprep.mubr.msk.f32.mxu0 %vm633_vm1, %v632_v2  ;;  %545 = vmatprep.mubr.msk.f32.mxu1 %vm633_vm1, %v632_v2  ;;  %v234_v7 = vld [vmem:[%s735_s2] sm:$0xff] }
  0x21   : > { %591 = vset.pattern.permute.xlu0 %v634_v6  ;;  %539 = vmatpush3.msk.msra.mxu0 %vm245_vm0, %v235_v4 }
  0x22   : > { %544 = vmatpush3.msk.msra.mxu1 %vm245_vm0, %v526_v5  ;;  %541 = vmatmul.mubr.msk.f32.vlgmr.msra.gmra.mxu0 %vm241_vm2, %v233_v3 }
  0x23   : > { %546 = vmatmul.mubr.msk.f32.vlgmr.msra.gmra.mxu1 %vm241_vm2, %v233_v3  ;;  %238 = vperm.xlu0 %591, %v234_v7  }
  0x9e   : > { %v239_v8 = vpop.permute.xlu0 %238 }
  0xe2   : > { %v315_v9 = vpop.f32.mrf.mxu0  ;;  %403 = sbr.rel (!%p690_p6) target bundleno = 239 (0xef), region = 77 }
  0xe3   : > { %v391_v10 = vpop.f32.mrf.mxu1  ;;  %v316_v11 = vadd.f32 %v315_v9, %v239_v8 }
  0xe4   : > { %v392_v12 = vadd.f32 %v391_v10, %v239_v8  ;;  %v542_v13 = vpop.f32.mrf.mxu0 }
  0xe5   : > { %v547_v14 = vpop.f32.mrf.mxu1  ;;  %319 = vst [vmem:[%s230_s11] sm:$0xff] %v316_v11 }
  0xe6   : > { %529 = vst [vmem:[%s230_s11 + $0x8] sm:$0xff] %v392_v12 }
  0xec   : > { %v439_v15 = vld [vmem:[%s230_s11] sm:$0xff] }
  0xed   : > { %v441_v16 = vld [vmem:[%s230_s11 + $0x8] sm:$0xff]  ;;  %440 = vst [vmem:[%s408_s20] sm:$0xff] %v439_v15 }
  0xee   : > { %442 = vst [vmem:[%s408_s20 + $0x10] sm:$0xff] %v441_v16 }
  0xef PF: > { %s13_s16 = sadd.s32 1, %s630_s16   ;;  %s738_s12 = smov %s618_s13 }
  0xf0   : > { %p10_p11 = scmp.ge.s32.totalorder %s13_s16, 4   ;;  %s739_s13 = smov %s695_s22 }
  0xf1   : > { %s740_s14 = smov %s626_s15  ;;  %s741_s15 = smov %s743_s17 }
  0xf2   :  { %12 = sbr.rel (!%p10_p11) target bundleno = 3 (0x3), region = 148 }

</bundles_post_ra>
